<compile_context>
chip_gen: v6e
topology: v6e:2x2x1
jax: 0.10.0
libtpu: 0.0.40
codegen_flags: <defaults>
</compile_context>

<pallas_src>
import functools
from typing import NamedTuple

import jax
import jax.numpy as jnp
from jax import lax
from jax.experimental import pallas as pl
from jax.experimental.pallas import tpu as pltpu

INPUT_SIZE = 784
HIDDEN_SIZE = 256
NUM_CLASSES = 10
OUT_PAD = 128          # lane-dense padded output width (>= NUM_CLASSES)
BN_EPS = 1e-5

_VMEM_CAP = None


def _round_up(n, m):
    return ((n + m - 1) // m) * m


def _vmem_capacity_bytes():
    """Generation-aware VMEM capacity (128 MiB on v5e/v6e, 64 MiB on v7x)."""
    global _VMEM_CAP
    if _VMEM_CAP is None:
        try:
            _VMEM_CAP = int(pltpu.get_tpu_info().vmem_capacity_bytes)
        except Exception:
            _VMEM_CAP = 64 << 20   # conservative (v7x physical)
    return _VMEM_CAP


def _vmem_limit(need_bytes, cap):
    return int(min(max(int(1.25 * need_bytes) + (4 << 20), 32 << 20),
                   int(0.9 * cap)))


def _batch_tile(batch):
    """Batch tile: one block for small batches; otherwise prefer an exact
    divisor (no padding copy), else the largest tile with <=12.5% padding."""
    b8 = _round_up(batch, 8)
    if b8 <= 2048:
        return b8
    for tb in (2048, 1024, 512, 256, 128):
        if batch % tb == 0:
            return tb
    for tb in (2048, 1024, 512, 256):
        if (_round_up(batch, tb) - batch) * 8 <= batch:
            return tb
    return 256


def _single_pass_vmem_bytes(padded, tile, dsize, h_dsize):
    # Explicit accounting: only the streamed x tiles are double-buffered;
    # weights / gamma / beta / b2 and the resident output block are single
    # copies (index maps are constant); finalize temporaries are O(tile)
    # thanks to the chunked finalize.
    x_bytes = 2 * tile * INPUT_SIZE * dsize
    w_bytes = INPUT_SIZE * HIDDEN_SIZE * dsize + HIDDEN_SIZE * OUT_PAD * dsize
    small = 6 * HIDDEN_SIZE * 4 + OUT_PAD * 4
    h_bytes = padded * HIDDEN_SIZE * h_dsize
    out_bytes = padded * OUT_PAD * 4
    fin_tmp = 4 * tile * HIDDEN_SIZE * 4
    return x_bytes + w_bytes + small + h_bytes + out_bytes + fin_tmp


class Net2Params(NamedTuple):
    w1: jax.Array      # (784, 256)  MXU dtype
    gamma: jax.Array   # (1, 256)    f32
    beta: jax.Array    # (1, 256)    f32
    w2: jax.Array      # (256, 128)  MXU dtype, zero-padded 10 -> 128 lanes
    b2: jax.Array      # (1, 128)    f32, zero-padded


def prepare_params(w1, b1, gamma, beta, w2, b2, *, mxu_dtype=jnp.bfloat16):
    """Pre-cast / pre-pad parameters ONCE, outside the per-call path.
    `b1` is accepted (to mirror the PyTorch parameter set) but unused: a
    per-feature constant added before BatchNorm is cancelled exactly by the
    mean subtraction."""
    del b1
    w1_m = jnp.asarray(w1, jnp.float32).astype(mxu_dtype)
    w2_f = jnp.asarray(w2, jnp.float32).reshape(HIDDEN_SIZE, NUM_CLASSES)
    w2_p = jnp.pad(w2_f, ((0, 0), (0, OUT_PAD - NUM_CLASSES))).astype(mxu_dtype)
    b2_f = jnp.asarray(b2, jnp.float32).reshape(1, NUM_CLASSES)
    b2_p = jnp.pad(b2_f, ((0, 0), (0, OUT_PAD - NUM_CLASSES)))
    gamma_f = jnp.asarray(gamma, jnp.float32).reshape(1, HIDDEN_SIZE)
    beta_f = jnp.asarray(beta, jnp.float32).reshape(1, HIDDEN_SIZE)
    return Net2Params(w1_m, gamma_f, beta_f, w2_p, b2_p)


# ---------------------------------------------------------------------------
# Single-pass kernel: fc1 + running BN stats per tile, chunked finalize.
# TODO(synk): on v7x a dual-TC split of this single-pass path would need a
# cross-core partial-stat combine (CMEM/VMEM_SHARED); the large-batch two-pass
# path below is already core-parallel, so only mid-size batches lose a core.
# ---------------------------------------------------------------------------
def _make_single_pass_kernel(true_batch, tile, n_tiles):
    inv_b = 1.0 / float(true_batch)

    def kernel(x_ref, w1_ref, gamma_ref, beta_ref, w2_ref, b2_ref,
               o_ref, h_ref, sum_ref, sq_ref):
        i = pl.program_id(0)

        @pl.when(i == 0)
        def _init():
            sum_ref[...] = jnp.zeros_like(sum_ref)
            sq_ref[...] = jnp.zeros_like(sq_ref)

        # fc1 tile: (tile, 784) @ (784, 256), f32 MXU accumulation.
        h = jnp.dot(x_ref[...], w1_ref[...], preferred_element_type=jnp.float32)

        row0 = pl.multiple_of(i * tile, tile)
        # Stats accumulate from the f32 result; storage may be bf16.
        h_ref[pl.ds(row0, tile), :] = h.astype(h_ref.dtype)
        sum_ref[...] += jnp.sum(h, axis=0, keepdims=True)
        sq_ref[...] += jnp.sum(h * h, axis=0, keepdims=True)

        @pl.when(i == pl.num_programs(0) - 1)
        def _finalize():
            # Full-batch BatchNorm1d (training forward) fused to scale/shift.
            mean = sum_ref[...] * inv_b
            var = sq_ref[...] * inv_b - mean * mean
            s = gamma_ref[...] * lax.rsqrt(var + BN_EPS)
            t = beta_ref[...] - mean * s

            # Chunked BN + ReLU + fc2: peak temporaries stay O(tile).
            def chunk(c, carry):
                r0 = pl.multiple_of(c * tile, tile)
                hc = h_ref[pl.ds(r0, tile), :].astype(jnp.float32)
                a = jnp.maximum(hc * s + t, 0.0)
                out = jnp.dot(a.astype(w2_ref.dtype), w2_ref[...],
                              preferred_element_type=jnp.float32)
                o_ref[pl.ds(r0, tile), :] = out + b2_ref[...]
                return carry

            lax.fori_loop(0, n_tiles, chunk, 0)

    return kernel


def _single_pass(x, p, batch, padded, tile, n_tiles, h_dtype, need, vmem_cap):
    dsize = jnp.dtype(p.w1.dtype).itemsize
    cost = pl.CostEstimate(
        flops=2 * padded * INPUT_SIZE * HIDDEN_SIZE
              + 2 * padded * HIDDEN_SIZE * OUT_PAD,
        transcendentals=HIDDEN_SIZE,
        bytes_accessed=padded * INPUT_SIZE * dsize
                       + (INPUT_SIZE * HIDDEN_SIZE + HIDDEN_SIZE * OUT_PAD) * dsize
                       + padded * OUT_PAD * 4)
    return pl.pallas_call(
        _make_single_pass_kernel(batch, tile, n_tiles),
        out_shape=jax.ShapeDtypeStruct((padded, OUT_PAD), jnp.float32),
        grid=(n_tiles,),
        in_specs=[
            pl.BlockSpec((tile, INPUT_SIZE), lambda i: (i, 0)),         # x tile
            pl.BlockSpec((INPUT_SIZE, HIDDEN_SIZE), lambda i: (0, 0)),  # w1
            pl.BlockSpec((1, HIDDEN_SIZE), lambda i: (0, 0)),           # gamma
            pl.BlockSpec((1, HIDDEN_SIZE), lambda i: (0, 0)),           # beta
            pl.BlockSpec((HIDDEN_SIZE, OUT_PAD), lambda i: (0, 0)),     # w2 (padded)
            pl.BlockSpec((1, OUT_PAD), lambda i: (0, 0)),               # b2 (padded)
        ],
        out_specs=pl.BlockSpec((padded, OUT_PAD), lambda i: (0, 0)),
        scratch_shapes=[
            pltpu.VMEM((padded, HIDDEN_SIZE), h_dtype),   # fc1 activations
            pltpu.VMEM((1, HIDDEN_SIZE), jnp.float32),    # per-feature sum
            pltpu.VMEM((1, HIDDEN_SIZE), jnp.float32),    # per-feature sum^2
        ],
        compiler_params=pltpu.CompilerParams(
            dimension_semantics=("arbitrary",),
            vmem_limit_bytes=_vmem_limit(need, vmem_cap)),
        cost_estimate=cost,
    )(x, p.w1, p.gamma, p.beta, p.w2, p.b2)


# ---------------------------------------------------------------------------
# Two-pass path (large batches / forced): both passes are batch-parallel, so
# the grid splits across both v7x TensorCores; h round-trips HBM in the MXU
# dtype instead of living in VMEM.
# ---------------------------------------------------------------------------
def _fc1_stats_kernel(x_ref, w1_ref, h_ref, sum_ref, sq_ref):
    h = jnp.dot(x_ref[...], w1_ref[...], preferred_element_type=jnp.float32)
    h_ref[...] = h.astype(h_ref.dtype)
    sum_ref[...] = jnp.sum(h, axis=0, keepdims=True)[None]
    sq_ref[...] = jnp.sum(h * h, axis=0, keepdims=True)[None]


def _bn_relu_fc2_kernel(h_ref, s_ref, t_ref, w2_ref, b2_ref, o_ref):
    a = jnp.maximum(h_ref[...].astype(jnp.float32) * s_ref[...] + t_ref[...], 0.0)
    o_ref[...] = jnp.dot(a.astype(w2_ref.dtype), w2_ref[...],
                         preferred_element_type=jnp.float32) + b2_ref[...]


def _two_pass(x, p, batch, padded, tile, n_tiles, h_dtype, vmem_cap):
    dsize = jnp.dtype(p.w1.dtype).itemsize
    h_dsize = jnp.dtype(h_dtype).itemsize

    need1 = (2 * tile * INPUT_SIZE * dsize + INPUT_SIZE * HIDDEN_SIZE * dsize
             + 2 * tile * HIDDEN_SIZE * h_dsize + 8 * HIDDEN_SIZE * 4
             + 2 * tile * HIDDEN_SIZE * 4)
    h, psum, psq = pl.pallas_call(
        _fc1_stats_kernel,
        out_shape=(jax.ShapeDtypeStruct((padded, HIDDEN_SIZE), h_dtype),
                   jax.ShapeDtypeStruct((n_tiles, 1, HIDDEN_SIZE), jnp.float32),
                   jax.ShapeDtypeStruct((n_tiles, 1, HIDDEN_SIZE), jnp.float32)),
        grid=(n_tiles,),
        in_specs=[pl.BlockSpec((tile, INPUT_SIZE), lambda i: (i, 0)),
                  pl.BlockSpec((INPUT_SIZE, HIDDEN_SIZE), lambda i: (0, 0))],
        out_specs=(pl.BlockSpec((tile, HIDDEN_SIZE), lambda i: (i, 0)),
                   pl.BlockSpec((1, 1, HIDDEN_SIZE), lambda i: (i, 0, 0)),
                   pl.BlockSpec((1, 1, HIDDEN_SIZE), lambda i: (i, 0, 0))),
        compiler_params=pltpu.CompilerParams(
            dimension_semantics=("parallel",),
            vmem_limit_bytes=_vmem_limit(need1, vmem_cap)),
    )(x, p.w1)

    # Tiny full-batch stat combine + fused BN scale/shift (XLA, negligible).
    inv_b = 1.0 / float(batch)
    mean = jnp.sum(psum[:, 0, :], axis=0, keepdims=True) * inv_b
    var = jnp.sum(psq[:, 0, :], axis=0, keepdims=True) * inv_b - mean * mean
    s = p.gamma * lax.rsqrt(var + BN_EPS)
    t = p.beta - mean * s

    need2 = (2 * tile * HIDDEN_SIZE * h_dsize + HIDDEN_SIZE * OUT_PAD * dsize
             + 2 * tile * OUT_PAD * 4 + 8 * HIDDEN_SIZE * 4
             + 3 * tile * HIDDEN_SIZE * 4)
    return pl.pallas_call(
        _bn_relu_fc2_kernel,
        out_shape=jax.ShapeDtypeStruct((padded, OUT_PAD), jnp.float32),
        grid=(n_tiles,),
        in_specs=[pl.BlockSpec((tile, HIDDEN_SIZE), lambda i: (i, 0)),
                  pl.BlockSpec((1, HIDDEN_SIZE), lambda i: (0, 0)),
                  pl.BlockSpec((1, HIDDEN_SIZE), lambda i: (0, 0)),
                  pl.BlockSpec((HIDDEN_SIZE, OUT_PAD), lambda i: (0, 0)),
                  pl.BlockSpec((1, OUT_PAD), lambda i: (0, 0))],
        out_specs=pl.BlockSpec((tile, OUT_PAD), lambda i: (i, 0)),
        compiler_params=pltpu.CompilerParams(
            dimension_semantics=("parallel",),
            vmem_limit_bytes=_vmem_limit(need2, vmem_cap)),
    )(h, s, t, p.w2, p.b2)


@functools.partial(jax.jit, static_argnames=("max_tile", "force_two_pass"))
def net2_forward(x, params: Net2Params, *, max_tile=None, force_two_pass=False):
    """Net2 forward.  For best performance supply `x` already in the params'
    MXU dtype (bf16 by default) so no re-materializing cast is emitted."""
    batch = x.shape[0]
    mxu_dtype = params.w1.dtype
    dsize = jnp.dtype(mxu_dtype).itemsize
    h_dtype = mxu_dtype                      # bf16 h halves VMEM/HBM for h
    h_dsize = jnp.dtype(h_dtype).itemsize

    if x.dtype != mxu_dtype:
        # Only emitted if the caller did not pre-cast x (costs one extra HBM
        # round trip of the dominant stream — prefer feeding bf16 x).
        x = x.astype(mxu_dtype)

    tile = _batch_tile(batch)
    if max_tile is not None:
        tile = max(8, (min(tile, int(max_tile)) // 8) * 8)
    padded = _round_up(batch, tile)
    n_tiles = padded // tile

    if padded != batch:
        # Zero rows are exact no-ops for the BN statistics because the fc1
        # bias is dropped (it would cancel under mean subtraction anyway).
        x = jnp.pad(x, ((0, padded - batch), (0, 0)))

    vmem_cap = _vmem_capacity_bytes()
    need = _single_pass_vmem_bytes(padded, tile, dsize, h_dsize)
    use_two_pass = bool(force_two_pass) or need > int(0.7 * vmem_cap)

    if not use_two_pass:
        out = _single_pass(x, params, batch, padded, tile, n_tiles,
                           h_dtype, need, vmem_cap)
    else:
        out = _two_pass(x, params, batch, padded, tile, n_tiles,
                        h_dtype, vmem_cap)
    return out[:batch, :NUM_CLASSES]


# ---------------------------------------------------------------------------
# Reference / init / test
# ---------------------------------------------------------------------------
def init_params(key):
    """PyTorch-style init: Linear uniform(-1/sqrt(fan_in), 1/sqrt(fan_in)),
    BatchNorm1d gamma=1, beta=0. Linear weights stored as (in, out)."""
    k1, k2, k3, k4 = jax.random.split(key, 4)
    bound1 = 1.0 / jnp.sqrt(INPUT_SIZE)
    w1 = jax.random.uniform(k1, (INPUT_SIZE, HIDDEN_SIZE), jnp.float32,
                            -bound1, bound1)
    b1 = jax.random.uniform(k2, (1, HIDDEN_SIZE), jnp.float32, -bound1, bound1)
    gamma = jnp.ones((1, HIDDEN_SIZE), jnp.float32)
    beta = jnp.zeros((1, HIDDEN_SIZE), jnp.float32)
    bound2 = 1.0 / jnp.sqrt(HIDDEN_SIZE)
    w2 = jax.random.uniform(k3, (HIDDEN_SIZE, NUM_CLASSES), jnp.float32,
                            -bound2, bound2)
    b2 = jax.random.uniform(k4, (1, NUM_CLASSES), jnp.float32, -bound2, bound2)
    return w1, b1, gamma, beta, w2, b2


def reference_forward(x, w1, b1, gamma, beta, w2, b2):
    h = x @ w1 + b1
    mean = jnp.mean(h, axis=0, keepdims=True)
    var = jnp.mean((h - mean) ** 2, axis=0, keepdims=True)
    h = (h - mean) / jnp.sqrt(var + BN_EPS) * gamma + beta
    a = jnp.maximum(h, 0.0)
    return a @ w2 + b2


if __name__ == "__main__":
    key = jax.random.PRNGKey(0)
    k_param, k_x = jax.random.split(key)
    raw = init_params(k_param)

    params_f32 = prepare_params(*raw, mxu_dtype=jnp.float32)
    params_bf16 = prepare_params(*raw, mxu_dtype=jnp.bfloat16)  # default path

    # batch=8: single-block path.  batch=200 with max_tile=64: batch padding,
    # multi-step stat accumulation and the chunked finalize.  force_two_pass
    # exercises the large-batch core-parallel two-pass path at a small size.
    for batch, max_tile in ((8, None), (200, 64)):
        x = jax.random.normal(k_x, (batch, INPUT_SIZE), jnp.float32)
        ref = reference_forward(x, *raw)

        out = jax.block_until_ready(
            net2_forward(x, params_f32, max_tile=max_tile))
        assert out.shape == (batch, NUM_CLASSES)
        assert jnp.allclose(out, ref, atol=1e-4, rtol=1e-4)

        # bf16 default path: x supplied pre-cast (no wrapper re-materialization).
        x_bf = x.astype(jnp.bfloat16)
        out_bf = jax.block_until_ready(
            net2_forward(x_bf, params_bf16, max_tile=max_tile))
        assert out_bf.shape == (batch, NUM_CLASSES)
        assert jnp.allclose(out_bf, ref, atol=3e-2, rtol=3e-2)

        out_tp = jax.block_until_ready(
            net2_forward(x_bf, params_bf16, max_tile=max_tile,
                         force_two_pass=True))
        assert out_tp.shape == (batch, NUM_CLASSES)
        assert jnp.allclose(out_tp, ref, atol=3e-2, rtol=3e-2)

    print("KERNEL_OK")
</pallas_src>

<mosaic_0001>
module attributes {stable_mosaic.version = 11 : i64} {
  func.func @kernel(%arg0: i32, %arg1: memref<8x784xf32, #tpu.memory_space<vmem>>, %arg2: memref<784x256xf32, #tpu.memory_space<vmem>>, %arg3: memref<1x256xf32, #tpu.memory_space<vmem>>, %arg4: memref<1x256xf32, #tpu.memory_space<vmem>>, %arg5: memref<256x128xf32, #tpu.memory_space<vmem>>, %arg6: memref<1x128xf32, #tpu.memory_space<vmem>>, %arg7: memref<8x128xf32, #tpu.memory_space<vmem>>, %arg8: memref<8x256xf32, #tpu.memory_space<vmem>>, %arg9: memref<1x256xf32, #tpu.memory_space<vmem>>, %arg10: memref<1x256xf32, #tpu.memory_space<vmem>>) attributes {dimension_semantics = [#tpu.dimension_semantics<arbitrary>], iteration_bounds = array<i64: 1>, scalar_prefetch = 0 : i64, scratch_operands = 3 : i64, tpu.core_type = #tpu.core_type<tc>, window_params = [{transform_indices = @transform_0, window_bounds = array<i64: 8, 784>}, {pipeline_mode = #tpu.pipeline_mode<synchronous>, transform_indices = @transform_1, window_bounds = array<i64: 784, 256>}, {pipeline_mode = #tpu.pipeline_mode<synchronous>, transform_indices = @transform_2, window_bounds = array<i64: 1, 256>}, {pipeline_mode = #tpu.pipeline_mode<synchronous>, transform_indices = @transform_3, window_bounds = array<i64: 1, 256>}, {pipeline_mode = #tpu.pipeline_mode<synchronous>, transform_indices = @transform_4, window_bounds = array<i64: 256, 128>}, {pipeline_mode = #tpu.pipeline_mode<synchronous>, transform_indices = @transform_5, window_bounds = array<i64: 1, 128>}, {pipeline_mode = #tpu.pipeline_mode<synchronous>, transform_indices = @transform_6, window_bounds = array<i64: 8, 128>}]} {
    %c0_i32 = arith.constant 0 : i32
    %0 = arith.cmpi eq, %arg0, %c0_i32 : i32
    %1 = arith.extui %0 : i1 to i32
    %c0_i32_0 = arith.constant 0 : i32
    %2 = arith.cmpi ne, %1, %c0_i32_0 : i32
    scf.if %2 {
      %cst_17 = arith.constant 0.000000e+00 : f32
      %24 = vector.broadcast %cst_17 : f32 to vector<1x256xf32>
      %c0_18 = arith.constant 0 : index
      %c0_19 = arith.constant 0 : index
      %25 = vector.load %arg9[%c0_18, %c0_19] : memref<1x256xf32, #tpu.memory_space<vmem>>, vector<1x256xf32>
      tpu.vector_store %arg9[%c0_18, %c0_19], %24 {strides = array<i32>} : memref<1x256xf32, #tpu.memory_space<vmem>>, vector<1x256xf32>,
      %cst_20 = arith.constant 0.000000e+00 : f32
      %26 = vector.broadcast %cst_20 : f32 to vector<1x256xf32>
      %c0_21 = arith.constant 0 : index
      %c0_22 = arith.constant 0 : index
      %27 = vector.load %arg10[%c0_21, %c0_22] : memref<1x256xf32, #tpu.memory_space<vmem>>, vector<1x256xf32>
      tpu.vector_store %arg10[%c0_21, %c0_22], %26 {strides = array<i32>} : memref<1x256xf32, #tpu.memory_space<vmem>>, vector<1x256xf32>,
    } else {
    }
    %c0 = arith.constant 0 : index
    %c0_1 = arith.constant 0 : index
    %3 = vector.load %arg1[%c0, %c0_1] : memref<8x784xf32, #tpu.memory_space<vmem>>, vector<8x784xf32>
    %c0_2 = arith.constant 0 : index
    %c0_3 = arith.constant 0 : index
    %4 = vector.load %arg2[%c0_2, %c0_3] : memref<784x256xf32, #tpu.memory_space<vmem>>, vector<784x256xf32>
    %cst = arith.constant dense<0.000000e+00> : vector<8x256xf32>
    %5 = tpu.matmul %3, %4, %cst {dimension_numbers = #tpu.dot_dimension_numbers<[1], [0], [0], [1], [0, 0, 1, 1], [], []>} : vector<8x784xf32>, vector<784x256xf32>, vector<8x256xf32> -> vector<8x256xf32>
    %c8_i32 = arith.constant 8 : i32
    %6 = arith.muli %arg0, %c8_i32 : i32
    %7 = tpu.assume_multiple %6, 8 : i32
    %8 = arith.index_cast %7 : i32 to index
    %c0_4 = arith.constant 0 : index
    %9 = vector.load %arg8[%8, %c0_4] : memref<8x256xf32, #tpu.memory_space<vmem>>, vector<8x256xf32>
    tpu.vector_store %arg8[%8, %c0_4], %5 {strides = array<i32>} : memref<8x256xf32, #tpu.memory_space<vmem>>, vector<8x256xf32>,
    %c0_5 = arith.constant 0 : index
    %c0_6 = arith.constant 0 : index
    %10 = vector.load %arg9[%c0_5, %c0_6] : memref<1x256xf32, #tpu.memory_space<vmem>>, vector<1x256xf32>
    %cst_7 = arith.constant dense<0.000000e+00> : vector<256xf32>
    %11 = vector.multi_reduction <add>, %5, %cst_7 [0] : vector<8x256xf32> to vector<256xf32>
    %12 = vector.shape_cast %11 : vector<256xf32> to vector<1x256xf32>
    %13 = arith.addf %10, %12 : vector<1x256xf32>
    %c0_8 = arith.constant 0 : index
    %c0_9 = arith.constant 0 : index
    %14 = vector.load %arg9[%c0_8, %c0_9] : memref<1x256xf32, #tpu.memory_space<vmem>>, vector<1x256xf32>
    tpu.vector_store %arg9[%c0_8, %c0_9], %13 {strides = array<i32>} : memref<1x256xf32, #tpu.memory_space<vmem>>, vector<1x256xf32>,
    %c0_10 = arith.constant 0 : index
    %c0_11 = arith.constant 0 : index
    %15 = vector.load %arg10[%c0_10, %c0_11] : memref<1x256xf32, #tpu.memory_space<vmem>>, vector<1x256xf32>
    %16 = arith.mulf %5, %5 : vector<8x256xf32>
    %cst_12 = arith.constant dense<0.000000e+00> : vector<256xf32>
    %17 = vector.multi_reduction <add>, %16, %cst_12 [0] : vector<8x256xf32> to vector<256xf32>
    %18 = vector.shape_cast %17 : vector<256xf32> to vector<1x256xf32>
    %19 = arith.addf %15, %18 : vector<1x256xf32>
    %c0_13 = arith.constant 0 : index
    %c0_14 = arith.constant 0 : index
    %20 = vector.load %arg10[%c0_13, %c0_14] : memref<1x256xf32, #tpu.memory_space<vmem>>, vector<1x256xf32>
    tpu.vector_store %arg10[%c0_13, %c0_14], %19 {strides = array<i32>} : memref<1x256xf32, #tpu.memory_space<vmem>>, vector<1x256xf32>,
    %c0_i32_15 = arith.constant 0 : i32
    %21 = arith.cmpi eq, %arg0, %c0_i32_15 : i32
    %22 = arith.extui %21 : i1 to i32
    %c0_i32_16 = arith.constant 0 : i32
    %23 = arith.cmpi ne, %22, %c0_i32_16 : i32
    scf.if %23 {
      %c0_17 = arith.constant 0 : index
      %c0_18 = arith.constant 0 : index
      %24 = vector.load %arg9[%c0_17, %c0_18] : memref<1x256xf32, #tpu.memory_space<vmem>>, vector<1x256xf32>
      %cst_19 = arith.constant 1.250000e-01 : f32
      %25 = vector.broadcast %cst_19 : f32 to vector<1x256xf32>
      %26 = arith.mulf %24, %25 : vector<1x256xf32>
      %c0_20 = arith.constant 0 : index
      %c0_21 = arith.constant 0 : index
      %27 = vector.load %arg10[%c0_20, %c0_21] : memref<1x256xf32, #tpu.memory_space<vmem>>, vector<1x256xf32>
      %cst_22 = arith.constant 1.250000e-01 : f32
      %28 = vector.broadcast %cst_22 : f32 to vector<1x256xf32>
      %29 = arith.mulf %27, %28 : vector<1x256xf32>
      %30 = arith.mulf %26, %26 : vector<1x256xf32>
      %31 = arith.subf %29, %30 : vector<1x256xf32>
      %c0_23 = arith.constant 0 : index
      %c0_24 = arith.constant 0 : index
      %32 = vector.load %arg3[%c0_23, %c0_24] : memref<1x256xf32, #tpu.memory_space<vmem>>, vector<1x256xf32>
      %cst_25 = arith.constant 9.99999974E-6 : f32
      %33 = vector.broadcast %cst_25 : f32 to vector<1x256xf32>
      %34 = arith.addf %31, %33 : vector<1x256xf32>
      %35 = math.rsqrt %34 : vector<1x256xf32>
      %36 = arith.mulf %32, %35 : vector<1x256xf32>
      %c0_26 = arith.constant 0 : index
      %c0_27 = arith.constant 0 : index
      %37 = vector.load %arg4[%c0_26, %c0_27] : memref<1x256xf32, #tpu.memory_space<vmem>>, vector<1x256xf32>
      %38 = arith.mulf %26, %36 : vector<1x256xf32>
      %39 = arith.subf %37, %38 : vector<1x256xf32>
      %c0_i32_28 = arith.constant 0 : i32
      %c8_i32_29 = arith.constant 8 : i32
      %40 = arith.muli %c0_i32_28, %c8_i32_29 : i32
      %41 = tpu.assume_multiple %40, 8 : i32
      %42 = arith.index_cast %41 : i32 to index
      %c0_30 = arith.constant 0 : index
      %43 = vector.load %arg8[%42, %c0_30] : memref<8x256xf32, #tpu.memory_space<vmem>>, vector<8x256xf32>
      %44 = vector.broadcast %36 : vector<1x256xf32> to vector<8x256xf32>
      %45 = arith.mulf %43, %44 : vector<8x256xf32>
      %46 = vector.broadcast %39 : vector<1x256xf32> to vector<8x256xf32>
      %47 = arith.addf %45, %46 : vector<8x256xf32>
      %cst_31 = arith.constant 0.000000e+00 : f32
      %48 = vector.broadcast %cst_31 : f32 to vector<8x256xf32>
      %49 = arith.maximumf %47, %48 : vector<8x256xf32>
      %c0_32 = arith.constant 0 : index
      %c0_33 = arith.constant 0 : index
      %50 = vector.load %arg5[%c0_32, %c0_33] : memref<256x128xf32, #tpu.memory_space<vmem>>, vector<256x128xf32>
      %cst_34 = arith.constant dense<0.000000e+00> : vector<8x128xf32>
      %51 = tpu.matmul %49, %50, %cst_34 {dimension_numbers = #tpu.dot_dimension_numbers<[1], [0], [0], [1], [0, 0, 1, 1], [], []>} : vector<8x256xf32>, vector<256x128xf32>, vector<8x128xf32> -> vector<8x128xf32>
      %c0_35 = arith.constant 0 : index
      %c0_36 = arith.constant 0 : index
      %52 = vector.load %arg6[%c0_35, %c0_36] : memref<1x128xf32, #tpu.memory_space<vmem>>, vector<1x128xf32>
      %53 = vector.broadcast %52 : vector<1x128xf32> to vector<8x128xf32>
      %54 = arith.addf %51, %53 : vector<8x128xf32>
      %55 = arith.index_cast %41 : i32 to index
      %c0_37 = arith.constant 0 : index
      %56 = vector.load %arg7[%55, %c0_37] : memref<8x128xf32, #tpu.memory_space<vmem>>, vector<8x128xf32>
      tpu.vector_store %arg7[%55, %c0_37], %54 {strides = array<i32>} : memref<8x128xf32, #tpu.memory_space<vmem>>, vector<8x128xf32>,
      %c1_i32 = arith.constant 1 : i32
    } else {
    }
    return
  }
  func.func @transform_0(%arg0: i32) -> (i32, i32) {
    %c0_i32 = arith.constant 0 : i32
    %c0_i32_0 = arith.constant 0 : i32
    return %arg0, %c0_i32 : i32, i32
  }
  func.func @transform_1(%arg0: i32) -> (i32, i32) {
    %c0_i32 = arith.constant 0 : i32
    %c0_i32_0 = arith.constant 0 : i32
    %c0_i32_1 = arith.constant 0 : i32
    return %c0_i32, %c0_i32_0 : i32, i32
  }
  func.func @transform_2(%arg0: i32) -> (i32, i32) {
    %c0_i32 = arith.constant 0 : i32
    %c0_i32_0 = arith.constant 0 : i32
    %c0_i32_1 = arith.constant 0 : i32
    return %c0_i32, %c0_i32_0 : i32, i32
  }
  func.func @transform_3(%arg0: i32) -> (i32, i32) {
    %c0_i32 = arith.constant 0 : i32
    %c0_i32_0 = arith.constant 0 : i32
    %c0_i32_1 = arith.constant 0 : i32
    return %c0_i32, %c0_i32_0 : i32, i32
  }
  func.func @transform_4(%arg0: i32) -> (i32, i32) {
    %c0_i32 = arith.constant 0 : i32
    %c0_i32_0 = arith.constant 0 : i32
    %c0_i32_1 = arith.constant 0 : i32
    return %c0_i32, %c0_i32_0 : i32, i32
  }
  func.func @transform_5(%arg0: i32) -> (i32, i32) {
    %c0_i32 = arith.constant 0 : i32
    %c0_i32_0 = arith.constant 0 : i32
    %c0_i32_1 = arith.constant 0 : i32
    return %c0_i32, %c0_i32_0 : i32, i32
  }
  func.func @transform_6(%arg0: i32) -> (i32, i32) {
    %c0_i32 = arith.constant 0 : i32
    %c0_i32_0 = arith.constant 0 : i32
    %c0_i32_1 = arith.constant 0 : i32
    return %c0_i32, %c0_i32_0 : i32, i32
  }
}

</mosaic_0001>

<bundles_post_ra>
// kernel: net2_forward.1
= control target key start
LH: loop header
LB: loop body
LE: loop exit
PB: predicated region body
PF: predicated region fallthrough
CT: control target
= control target key end

     0   :  { %11 = vsyncpa [#allocation6], 0  ;;  %s1046_s0 = inlined_call_operand.hbm [shape: f32[8,784], index: 0, kind: input, shape index: {}]   ;;  %s1047_s1 = inlined_call_operand.hbm [shape: f32[784,256], index: 1, kind: input, shape index: {}]   ;;  %s1048_s2 = inlined_call_operand.vmem [shape: f32[1,256], index: 2, kind: input, shape index: {}]   ;;  %s1049_s3 = inlined_call_operand.vmem [shape: f32[1,256], index: 3, kind: input, shape index: {}]   ;;  %s1050_s4 = inlined_call_operand.hbm [shape: f32[256,128], index: 4, kind: input, shape index: {}]   ;;  %s1051_s5 = inlined_call_operand.vmem [shape: f32[1,128], index: 5, kind: input, shape index: {}]   ;;  %s1052_s6 = inlined_call_operand.hbm [shape: f32[8,128], index: 6, kind: output, shape index: {}]  }
   0x1   :  { %12 = vsyncpa [#allocation9], 0 }
   0x2   :  { %13 = vsyncpa [#allocation7], 0  ;;  %s956_s21 = smov [#allocation8]  }
   0x3   :  { %s29_s22 = sshll.u32 %s956_s21, 4  ;;  %s30_s22 = int_to_ptr.vmem [resolvable:$true] %s29_s22 }
   0x4   :  { %s878_s23 = scalar_lea.vmem %s30_s22, 25088  ;;  %p883_p1 = scmp.lt.s32.totalorder %s30_s22, %s30_s22 }
   0x5   :  { %p879_p0 = scmp.ne.s32.totalorder %s30_s22, %s878_s23  ;;  %p884_p2 = scmp.lt.s32.totalorder %s878_s23, %s878_s23 }
   0x7   :  { %p885_p3 = por %p884_p2, %p883_p1 }
   0x9   :  { %p886_p4 = pnand %p885_p3, %p879_p0 }
   0xb   :  { %889 = shalt.err (!%p886_p4)
}
   0xc   :  { %s957_s24 = smov 256   ;;  %s958_s25 = smov 16  }
   0xd   :  { %35 = dma.hbm_to_vmem [thread:$0]  %s1047_s1, 25088, %s30_s22, [#allocation9], %s957_s24, %s957_s24, %s958_s25  }
   0xe   :  { %s959_s28 = smov [#allocation5]   ;;  %s960_s30 = smov [#allocation10]  }
   0xf   :  { %s20_s29 = sshll.u32 %s959_s28, 4  ;;  %s45_s7 = sshll.u32 %s960_s30, 4  ;;  %s21_s29 = int_to_ptr.vmem [resolvable:$true] %s20_s29  ;;  %s46_s7 = int_to_ptr.vmem [resolvable:$true] %s45_s7 }
  0x10   :  { %s898_s8 = scalar_lea.vmem %s21_s29, 896  ;;  %p903_p6 = scmp.lt.s32.totalorder %s21_s29, %s21_s29 }
  0x11   :  { %p899_p5 = scmp.ne.s32.totalorder %s21_s29, %s898_s8  ;;  %p904_p7 = scmp.lt.s32.totalorder %s898_s8, %s898_s8 }
  0x13   :  { %p905_p8 = por %p904_p7, %p903_p6 }
  0x15   :  { %p906_p9 = pnand %p905_p8, %p899_p5 }
  0x17   :  { %909 = shalt.err (!%p906_p9)
}
  0x18   :  { %23 = dma.hbm_to_vmem [thread:$0]  %s1046_s0, 896, %s21_s29, [#allocation6]  }
  0x19   :  { %s918_s11 = scalar_lea.vmem %s46_s7, 4096  ;;  %p923_p11 = scmp.lt.s32.totalorder %s46_s7, %s46_s7 }
  0x1a   :  { %p919_p10 = scmp.ne.s32.totalorder %s46_s7, %s918_s11  ;;  %p924_p12 = scmp.lt.s32.totalorder %s918_s11, %s918_s11 }
  0x1c   :  { %p925_p13 = por %p924_p12, %p923_p11 }
  0x1e   :  { %p926_p0 = pnand %p925_p13, %p919_p10 }
  0x20   :  { %929 = shalt.err (!%p926_p0)
}
  0x21   :  { %s961_s1 = smov 128   ;;  %s962_s12 = smov 8  }
  0x22   :  { %51 = dma.hbm_to_vmem [thread:$0]  %s1050_s4, 4096, %s46_s7, [#allocation9], %s961_s1, %s961_s1, %s962_s12  }
  0x23   :  { %950 = dma.done.wait [#allocation6], 896  }
  0x24   :  { %951 = vsyncadd [#allocation6], 4294966400 }
  0x25   :  { %952 = dma.done.wait [#allocation9], 29184  }
  0x26   :  { %953 = vsyncadd [#allocation9], 4294938112  ;;  %v111_v0 = vld [vmem:[#allocation8 + $0xf8] sm:$0xff]  ;;  %v110_v2 = vld [vmem:[#allocation8 + $0xf0] sm:$0xff]  ;;  %v67_v9 = vlaneseq  ;;  %v963_v18 = vmov 0.0   ;;  %vm276_vm1 = vcmask 130048  }
  0x27   :  { %v175_v1 = vld [vmem:[#allocation8 + $0x2f8] sm:$0xff]  ;;  %280 = vmatprep.subr.mxu0 %v111_v0  ;;  %v174_v3 = vld [vmem:[#allocation8 + $0x2f0] sm:$0xff]  ;;  %v109_v4 = vld [vmem:[#allocation8 + $0xe8] sm:$0xff] }
  0x28   :  { %351 = vmatprep.subr.mxu1 %v175_v1  ;;  %v173_v5 = vld [vmem:[#allocation8 + $0x2e8] sm:$0xff]  ;;  %281 = vmatpush1.msra.mxu0 %v110_v2  ;;  %v108_v6 = vld [vmem:[#allocation8 + $0xe0] sm:$0xff]  ;;  %v107_v8 = vld [vmem:[#allocation8 + $0xd8] sm:$0xff]  ;;  %vm1011_vm0 = vcmp.lt.s32.totalorder %v67_v9, 256 }
  0x29   :  { %352 = vmatpush1.msra.mxu1 %v174_v3  ;;  %v172_v7 = vld [vmem:[#allocation8 + $0x2e0] sm:$0xff]  ;;  %282 = vmatprep.subr.mxu0 %v109_v4  ;;  %v171_v10 = vld [vmem:[#allocation8 + $0x2d8] sm:$0xff]  ;;  %v106_v11 = vld [vmem:[#allocation8 + $0xd0] sm:$0xff]  ;;  %71 = vst.msk [vmem:[#allocation3] sm:$0x3] %vm1011_vm0, %v963_v18 }
  0x2a   :  { %353 = vmatprep.subr.mxu1 %v173_v5  ;;  %v170_v12 = vld [vmem:[#allocation8 + $0x2d0] sm:$0xff]  ;;  %283 = vmatpush1.msra.mxu0 %v108_v6  ;;  %v105_v13 = vld [vmem:[#allocation8 + $0xc8] sm:$0xff]  ;;  %v104_v16 = vld [vmem:[#allocation8 + $0xc0] sm:$0xff]  ;;  %72 = vst.msk [vmem:[#allocation4] sm:$0x3] %vm1011_vm0, %v963_v18 }
  0x2b   :  { %354 = vmatpush1.msra.mxu1 %v172_v7  ;;  %v169_v14 = vld [vmem:[#allocation8 + $0x2c8] sm:$0xff]  ;;  %284 = vmatprep.subr.mxu0 %v107_v8  ;;  %v168_v17 = vld [vmem:[#allocation8 + $0x2c0] sm:$0xff]  ;;  %v103_v19 = vld [vmem:[#allocation8 + $0xb8] sm:$0xff] }
  0x2c   :  { %355 = vmatprep.subr.mxu1 %v171_v10  ;;  %285 = vmatpush1.msra.mxu0 %v106_v11  ;;  %v167_v20 = vld [vmem:[#allocation8 + $0x2b8] sm:$0xff]  ;;  %v102_v21 = vld [vmem:[#allocation8 + $0xb0] sm:$0xff]  ;;  %v101_v23 = vld [vmem:[#allocation8 + $0xa8] sm:$0xff] }
  0x2d   :  { %356 = vmatpush1.msra.mxu1 %v170_v12  ;;  %286 = vmatprep.subr.mxu0 %v105_v13  ;;  %v166_v22 = vld [vmem:[#allocation8 + $0x2b0] sm:$0xff]  ;;  %v165_v24 = vld [vmem:[#allocation8 + $0x2a8] sm:$0xff]  ;;  %v100_v25 = vld [vmem:[#allocation8 + $0xa0] sm:$0xff] }
  0x2e   :  { %357 = vmatprep.subr.mxu1 %v169_v14  ;;  %287 = vmatpush1.msra.mxu0 %v104_v16  ;;  %v164_v26 = vld [vmem:[#allocation8 + $0x2a0] sm:$0xff]  ;;  %v99_v27 = vld [vmem:[#allocation8 + $0x98] sm:$0xff]  ;;  %v98_v29 = vld [vmem:[#allocation8 + $0x90] sm:$0xff] }
  0x2f   :  { %358 = vmatpush1.msra.mxu1 %v168_v17  ;;  %288 = vmatprep.subr.mxu0 %v103_v19  ;;  %v163_v28 = vld [vmem:[#allocation8 + $0x298] sm:$0xff]  ;;  %v162_v30 = vld [vmem:[#allocation8 + $0x290] sm:$0xff]  ;;  %v97_v31 = vld [vmem:[#allocation8 + $0x88] sm:$0xff] }
  0x30   :  { %359 = vmatprep.subr.mxu1 %v167_v20  ;;  %289 = vmatpush1.msra.mxu0 %v102_v21  ;;  %v161_v32 = vld [vmem:[#allocation8 + $0x288] sm:$0xff]  ;;  %v96_v33 = vld [vmem:[#allocation8 + $0x80] sm:$0xff]  ;;  %v95_v35 = vld [vmem:[#allocation8 + $0x78] sm:$0xff] }
  0x31   :  { %360 = vmatpush1.msra.mxu1 %v166_v22  ;;  %290 = vmatprep.subr.mxu0 %v101_v23  ;;  %v160_v34 = vld [vmem:[#allocation8 + $0x280] sm:$0xff]  ;;  %v159_v36 = vld [vmem:[#allocation8 + $0x278] sm:$0xff]  ;;  %v94_v37 = vld [vmem:[#allocation8 + $0x70] sm:$0xff] }
  0x32   :  { %361 = vmatprep.subr.mxu1 %v165_v24  ;;  %291 = vmatpush1.msra.mxu0 %v100_v25  ;;  %v158_v38 = vld [vmem:[#allocation8 + $0x270] sm:$0xff]  ;;  %v93_v39 = vld [vmem:[#allocation8 + $0x68] sm:$0xff]  ;;  %v92_v41 = vld [vmem:[#allocation8 + $0x60] sm:$0xff] }
  0x33   :  { %362 = vmatpush1.msra.mxu1 %v164_v26  ;;  %292 = vmatprep.subr.mxu0 %v99_v27  ;;  %v157_v40 = vld [vmem:[#allocation8 + $0x268] sm:$0xff]  ;;  %v156_v42 = vld [vmem:[#allocation8 + $0x260] sm:$0xff]  ;;  %v91_v43 = vld [vmem:[#allocation8 + $0x58] sm:$0xff] }
  0x34   :  { %363 = vmatprep.subr.mxu1 %v163_v28  ;;  %293 = vmatpush1.msra.mxu0 %v98_v29  ;;  %v155_v44 = vld [vmem:[#allocation8 + $0x258] sm:$0xff]  ;;  %v90_v45 = vld [vmem:[#allocation8 + $0x50] sm:$0xff]  ;;  %v89_v47 = vld [vmem:[#allocation8 + $0x48] sm:$0xff] }
  0x35   :  { %364 = vmatpush1.msra.mxu1 %v162_v30  ;;  %294 = vmatprep.subr.mxu0 %v97_v31  ;;  %v154_v46 = vld [vmem:[#allocation8 + $0x250] sm:$0xff]  ;;  %v153_v48 = vld [vmem:[#allocation8 + $0x248] sm:$0xff]  ;;  %v88_v49 = vld [vmem:[#allocation8 + $0x40] sm:$0xff] }
  0x36   :  { %365 = vmatprep.subr.mxu1 %v161_v32  ;;  %295 = vmatpush1.msra.mxu0 %v96_v33  ;;  %v152_v50 = vld [vmem:[#allocation8 + $0x240] sm:$0xff]  ;;  %v87_v51 = vld [vmem:[#allocation8 + $0x38] sm:$0xff]  ;;  %v86_v53 = vld [vmem:[#allocation8 + $0x30] sm:$0xff] }
  0x37   :  { %366 = vmatpush1.msra.mxu1 %v160_v34  ;;  %296 = vmatprep.subr.mxu0 %v95_v35  ;;  %v151_v52 = vld [vmem:[#allocation8 + $0x238] sm:$0xff]  ;;  %v150_v54 = vld [vmem:[#allocation8 + $0x230] sm:$0xff]  ;;  %v85_v55 = vld [vmem:[#allocation8 + $0x28] sm:$0xff] }
  0x38   :  { %367 = vmatprep.subr.mxu1 %v159_v36  ;;  %297 = vmatpush1.msra.mxu0 %v94_v37  ;;  %v149_v56 = vld [vmem:[#allocation8 + $0x228] sm:$0xff]  ;;  %v84_v57 = vld [vmem:[#allocation8 + $0x20] sm:$0xff]  ;;  %v83_v59 = vld [vmem:[#allocation8 + $0x18] sm:$0xff] }
  0x39   :  { %368 = vmatpush1.msra.mxu1 %v158_v38  ;;  %298 = vmatprep.subr.mxu0 %v93_v39  ;;  %v148_v58 = vld [vmem:[#allocation8 + $0x220] sm:$0xff]  ;;  %v147_v60 = vld [vmem:[#allocation8 + $0x218] sm:$0xff]  ;;  %v82_v61 = vld [vmem:[#allocation8 + $0x10] sm:$0xff] }
  0x3a   :  { %369 = vmatprep.subr.mxu1 %v157_v40  ;;  %299 = vmatpush1.msra.mxu0 %v92_v41  ;;  %v146_v62 = vld [vmem:[#allocation8 + $0x210] sm:$0xff]  ;;  %v81_v63 = vld [vmem:[#allocation8 + $0x8] sm:$0xff]  ;;  %v80_v1 = vld [vmem:[#allocation8] sm:$0xff] }
  0x3b   :  { %370 = vmatpush1.msra.mxu1 %v156_v42  ;;  %300 = vmatprep.subr.mxu0 %v91_v43  ;;  %v145_v0 = vld [vmem:[#allocation8 + $0x208] sm:$0xff]  ;;  %v144_v2 = vld [vmem:[#allocation8 + $0x200] sm:$0xff]  ;;  %v143_v3 = vld [vmem:[#allocation8 + $0x1f8] sm:$0xff] }
  0x3c   :  { %371 = vmatprep.subr.mxu1 %v155_v44  ;;  %301 = vmatpush1.msra.mxu0 %v90_v45  ;;  %v207_v4 = vld [vmem:[#allocation8 + $0x3f8] sm:$0xff]  ;;  %v142_v5 = vld [vmem:[#allocation8 + $0x1f0] sm:$0xff]  ;;  %v141_v7 = vld [vmem:[#allocation8 + $0x1e8] sm:$0xff] }
  0x3d   :  { %372 = vmatpush1.msra.mxu1 %v154_v46  ;;  %302 = vmatprep.subr.mxu0 %v89_v47  ;;  %v206_v6 = vld [vmem:[#allocation8 + $0x3f0] sm:$0xff]  ;;  %v205_v8 = vld [vmem:[#allocation8 + $0x3e8] sm:$0xff]  ;;  %v140_v10 = vld [vmem:[#allocation8 + $0x1e0] sm:$0xff] }
  0x3e   :  { %373 = vmatprep.subr.mxu1 %v153_v48  ;;  %303 = vmatpush1.msra.mxu0 %v88_v49  ;;  %v204_v11 = vld [vmem:[#allocation8 + $0x3e0] sm:$0xff]  ;;  %v139_v12 = vld [vmem:[#allocation8 + $0x1d8] sm:$0xff]  ;;  %v138_v14 = vld [vmem:[#allocation8 + $0x1d0] sm:$0xff] }
  0x3f   :  { %374 = vmatpush1.msra.mxu1 %v152_v50  ;;  %304 = vmatprep.subr.mxu0 %v87_v51  ;;  %v203_v13 = vld [vmem:[#allocation8 + $0x3d8] sm:$0xff]  ;;  %v202_v16 = vld [vmem:[#allocation8 + $0x3d0] sm:$0xff]  ;;  %v137_v17 = vld [vmem:[#allocation8 + $0x1c8] sm:$0xff] }
  0x40   :  { %375 = vmatprep.subr.mxu1 %v151_v52  ;;  %305 = vmatpush1.msra.mxu0 %v86_v53  ;;  %v201_v19 = vld [vmem:[#allocation8 + $0x3c8] sm:$0xff]  ;;  %v136_v20 = vld [vmem:[#allocation8 + $0x1c0] sm:$0xff]  ;;  %v135_v22 = vld [vmem:[#allocation8 + $0x1b8] sm:$0xff] }
  0x41   :  { %376 = vmatpush1.msra.mxu1 %v150_v54  ;;  %306 = vmatprep.subr.mxu0 %v85_v55  ;;  %v200_v21 = vld [vmem:[#allocation8 + $0x3c0] sm:$0xff]  ;;  %v199_v23 = vld [vmem:[#allocation8 + $0x3b8] sm:$0xff]  ;;  %v134_v24 = vld [vmem:[#allocation8 + $0x1b0] sm:$0xff] }
  0x42   :  { %377 = vmatprep.subr.mxu1 %v149_v56  ;;  %307 = vmatpush1.msra.mxu0 %v84_v57  ;;  %v198_v25 = vld [vmem:[#allocation8 + $0x3b0] sm:$0xff]  ;;  %v133_v26 = vld [vmem:[#allocation8 + $0x1a8] sm:$0xff]  ;;  %v132_v28 = vld [vmem:[#allocation8 + $0x1a0] sm:$0xff] }
  0x43   :  { %378 = vmatpush1.msra.mxu1 %v148_v58  ;;  %308 = vmatprep.subr.mxu0 %v83_v59  ;;  %v197_v27 = vld [vmem:[#allocation8 + $0x3a8] sm:$0xff]  ;;  %v196_v29 = vld [vmem:[#allocation8 + $0x3a0] sm:$0xff]  ;;  %v131_v30 = vld [vmem:[#allocation8 + $0x198] sm:$0xff] }
  0x44   :  { %379 = vmatprep.subr.mxu1 %v147_v60  ;;  %309 = vmatpush1.msra.mxu0 %v82_v61  ;;  %v195_v31 = vld [vmem:[#allocation8 + $0x398] sm:$0xff]  ;;  %v130_v32 = vld [vmem:[#allocation8 + $0x190] sm:$0xff]  ;;  %v129_v34 = vld [vmem:[#allocation8 + $0x188] sm:$0xff] }
  0x45   :  { %380 = vmatpush1.msra.mxu1 %v146_v62  ;;  %310 = vmatprep.subr.mxu0 %v81_v63  ;;  %v194_v33 = vld [vmem:[#allocation8 + $0x390] sm:$0xff]  ;;  %v193_v35 = vld [vmem:[#allocation8 + $0x388] sm:$0xff]  ;;  %v128_v36 = vld [vmem:[#allocation8 + $0x180] sm:$0xff] }
  0x46   :  { %381 = vmatprep.subr.mxu1 %v145_v0  ;;  %311 = vmatpush1.msra.mxu0 %v80_v1  ;;  %v192_v37 = vld [vmem:[#allocation8 + $0x380] sm:$0xff]  ;;  %v127_v38 = vld [vmem:[#allocation8 + $0x178] sm:$0xff]  ;;  %v126_v40 = vld [vmem:[#allocation8 + $0x170] sm:$0xff] }
  0x47   :  { %382 = vmatpush1.msra.mxu1 %v144_v2  ;;  %312 = vmatprep.subr.mxu0 %v143_v3  ;;  %v191_v39 = vld [vmem:[#allocation8 + $0x378] sm:$0xff]  ;;  %v190_v41 = vld [vmem:[#allocation8 + $0x370] sm:$0xff]  ;;  %v125_v42 = vld [vmem:[#allocation8 + $0x168] sm:$0xff] }
  0x48   :  { %383 = vmatprep.subr.mxu1 %v207_v4  ;;  %313 = vmatpush2.msra.mxu0 %v142_v5  ;;  %v189_v43 = vld [vmem:[#allocation8 + $0x368] sm:$0xff]  ;;  %v124_v44 = vld [vmem:[#allocation8 + $0x160] sm:$0xff]  ;;  %v123_v46 = vld [vmem:[#allocation8 + $0x158] sm:$0xff] }
  0x49   :  { %384 = vmatpush2.msra.mxu1 %v206_v6  ;;  %314 = vmatprep.subr.mxu0 %v141_v7  ;;  %v188_v45 = vld [vmem:[#allocation8 + $0x360] sm:$0xff]  ;;  %v187_v47 = vld [vmem:[#allocation8 + $0x358] sm:$0xff]  ;;  %v122_v48 = vld [vmem:[#allocation8 + $0x150] sm:$0xff] }
  0x4a   :  { %385 = vmatprep.subr.mxu1 %v205_v8  ;;  %315 = vmatpush2.msra.mxu0 %v140_v10  ;;  %v186_v49 = vld [vmem:[#allocation8 + $0x350] sm:$0xff]  ;;  %v121_v50 = vld [vmem:[#allocation8 + $0x148] sm:$0xff]  ;;  %v120_v52 = vld [vmem:[#allocation8 + $0x140] sm:$0xff] }
  0x4b   :  { %386 = vmatpush2.msra.mxu1 %v204_v11  ;;  %316 = vmatprep.subr.mxu0 %v139_v12  ;;  %v185_v51 = vld [vmem:[#allocation8 + $0x348] sm:$0xff]  ;;  %v184_v53 = vld [vmem:[#allocation8 + $0x340] sm:$0xff]  ;;  %v119_v54 = vld [vmem:[#allocation8 + $0x138] sm:$0xff] }
  0x4c   :  { %387 = vmatprep.subr.mxu1 %v203_v13  ;;  %317 = vmatpush2.msra.mxu0 %v138_v14  ;;  %v183_v55 = vld [vmem:[#allocation8 + $0x338] sm:$0xff]  ;;  %v118_v56 = vld [vmem:[#allocation8 + $0x130] sm:$0xff]  ;;  %v117_v58 = vld [vmem:[#allocation8 + $0x128] sm:$0xff] }
  0x4d   :  { %388 = vmatpush2.msra.mxu1 %v202_v16  ;;  %318 = vmatprep.subr.mxu0 %v137_v17  ;;  %v182_v57 = vld [vmem:[#allocation8 + $0x330] sm:$0xff]  ;;  %v181_v59 = vld [vmem:[#allocation8 + $0x328] sm:$0xff]  ;;  %v116_v60 = vld [vmem:[#allocation8 + $0x120] sm:$0xff] }
  0x4e   :  { %389 = vmatprep.subr.mxu1 %v201_v19  ;;  %319 = vmatpush2.msra.mxu0 %v136_v20  ;;  %v180_v61 = vld [vmem:[#allocation8 + $0x320] sm:$0xff]  ;;  %v115_v62 = vld [vmem:[#allocation8 + $0x118] sm:$0xff]  ;;  %v114_v0 = vld [vmem:[#allocation8 + $0x110] sm:$0xff] }
  0x4f   :  { %390 = vmatpush2.msra.mxu1 %v200_v21  ;;  %320 = vmatprep.subr.mxu0 %v135_v22  ;;  %v179_v63 = vld [vmem:[#allocation8 + $0x318] sm:$0xff]  ;;  %v178_v1 = vld [vmem:[#allocation8 + $0x310] sm:$0xff]  ;;  %v113_v2 = vld [vmem:[#allocation8 + $0x108] sm:$0xff] }
  0x50   :  { %391 = vmatprep.subr.mxu1 %v199_v23  ;;  %321 = vmatpush2.msra.mxu0 %v134_v24  ;;  %v177_v3 = vld [vmem:[#allocation8 + $0x308] sm:$0xff]  ;;  %v112_v4 = vld [vmem:[#allocation8 + $0x100] sm:$0xff]  ;;  %v74_v5 = vld [vmem:[#allocation5 + $0x8] sm:$0xff] }
  0x51   :  { %392 = vmatpush2.msra.mxu1 %v198_v25  ;;  %322 = vmatprep.subr.mxu0 %v133_v26  ;;  %v176_v6 = vld [vmem:[#allocation8 + $0x300] sm:$0xff]  ;;  %v73_v8 = vld [vmem:[#allocation5] sm:$0xff]  ;;  %v75_v10 = vld [vmem:[#allocation5 + $0x10] sm:$0xff] }
  0x52   :  { %393 = vmatprep.subr.mxu1 %v197_v27  ;;  %323 = vmatpush2.msra.mxu0 %v132_v28  ;;  %v76_v7 = vld [vmem:[#allocation5 + $0x18] sm:$0xff]  ;;  %v239_v11 = vld [vmem:[#allocation8 + $0x4f8] sm:$0xff]  ;;  %v238_v13 = vld [vmem:[#allocation8 + $0x4f0] sm:$0xff] }
  0x53   :  { %394 = vmatpush2.msra.mxu1 %v196_v29  ;;  %324 = vmatprep.subr.mxu0 %v131_v30  ;;  %v275_v12 = vld [vmem:[#allocation8 + $0x618] sm:$0xff]  ;;  %v274_v14 = vld [vmem:[#allocation8 + $0x610] sm:$0xff]  ;;  %v237_v16 = vld [vmem:[#allocation8 + $0x4e8] sm:$0xff] }
  0x54   :  { %395 = vmatprep.subr.mxu1 %v195_v31  ;;  %325 = vmatpush2.msra.mxu0 %v130_v32  ;;  %v273_v17 = vld [vmem:[#allocation8 + $0x608] sm:$0xff]  ;;  %v236_v19 = vld [vmem:[#allocation8 + $0x4e0] sm:$0xff]  ;;  %v78_v20 = vld [vmem:[#allocation5 + $0x28] sm:$0xff] }
  0x55   :  { %396 = vmatpush2.msra.mxu1 %v194_v33  ;;  %326 = vmatprep.subr.mxu0 %v129_v34  ;;  %v235_v21 = vld [vmem:[#allocation8 + $0x4d8] sm:$0xff]  ;;  %v272_v22 = vld [vmem:[#allocation8 + $0x600] sm:$0xff]  ;;  %v234_v23 = vld [vmem:[#allocation8 + $0x4d0] sm:$0xff] }
  0x56   :  { %397 = vmatprep.subr.mxu1 %v193_v35  ;;  %327 = vmatpush2.msra.mxu0 %v128_v36  ;;  %v233_v24 = vld [vmem:[#allocation8 + $0x4c8] sm:$0xff]  ;;  %v79_v25 = vld [vmem:[#allocation5 + $0x30] sm:$0xff]  ;;  %v232_v26 = vld [vmem:[#allocation8 + $0x4c0] sm:$0xff] }
  0x57   :  { %398 = vmatpush2.msra.mxu1 %v192_v37  ;;  %328 = vmatprep.subr.mxu0 %v127_v38  ;;  %v231_v27 = vld [vmem:[#allocation8 + $0x4b8] sm:$0xff]  ;;  %v230_v28 = vld [vmem:[#allocation8 + $0x4b0] sm:$0xff]  ;;  %v229_v29 = vld [vmem:[#allocation8 + $0x4a8] sm:$0xff] }
  0x58   :  { %399 = vmatprep.subr.mxu1 %v191_v39  ;;  %329 = vmatpush2.msra.mxu0 %v126_v40  ;;  %v228_v30 = vld [vmem:[#allocation8 + $0x4a0] sm:$0xff]  ;;  %v227_v31 = vld [vmem:[#allocation8 + $0x498] sm:$0xff]  ;;  %v226_v32 = vld [vmem:[#allocation8 + $0x490] sm:$0xff] }
  0x59   :  { %400 = vmatpush2.msra.mxu1 %v190_v41  ;;  %330 = vmatprep.subr.mxu0 %v125_v42  ;;  %v225_v33 = vld [vmem:[#allocation8 + $0x488] sm:$0xff]  ;;  %v224_v34 = vld [vmem:[#allocation8 + $0x480] sm:$0xff]  ;;  %v223_v35 = vld [vmem:[#allocation8 + $0x478] sm:$0xff] }
  0x5a   :  { %401 = vmatprep.subr.mxu1 %v189_v43  ;;  %331 = vmatpush2.msra.mxu0 %v124_v44  ;;  %v222_v36 = vld [vmem:[#allocation8 + $0x470] sm:$0xff]  ;;  %v220_v37 = vld [vmem:[#allocation8 + $0x460] sm:$0xff]  ;;  %v219_v38 = vld [vmem:[#allocation8 + $0x458] sm:$0xff] }
  0x5b   :  { %402 = vmatpush2.msra.mxu1 %v188_v45  ;;  %332 = vmatprep.subr.mxu0 %v123_v46  ;;  %v218_v39 = vld [vmem:[#allocation8 + $0x450] sm:$0xff]  ;;  %v217_v40 = vld [vmem:[#allocation8 + $0x448] sm:$0xff]  ;;  %v216_v41 = vld [vmem:[#allocation8 + $0x440] sm:$0xff] }
  0x5c   :  { %403 = vmatprep.subr.mxu1 %v187_v47  ;;  %333 = vmatpush2.msra.mxu0 %v122_v48  ;;  %v215_v42 = vld [vmem:[#allocation8 + $0x438] sm:$0xff]  ;;  %v214_v43 = vld [vmem:[#allocation8 + $0x430] sm:$0xff]  ;;  %v213_v44 = vld [vmem:[#allocation8 + $0x428] sm:$0xff] }
  0x5d   :  { %404 = vmatpush2.msra.mxu1 %v186_v49  ;;  %334 = vmatprep.subr.mxu0 %v121_v50  ;;  %v212_v45 = vld [vmem:[#allocation8 + $0x420] sm:$0xff]  ;;  %v211_v46 = vld [vmem:[#allocation8 + $0x418] sm:$0xff]  ;;  %v210_v47 = vld [vmem:[#allocation8 + $0x410] sm:$0xff] }
  0x5e   :  { %405 = vmatprep.subr.mxu1 %v185_v51  ;;  %335 = vmatpush2.msra.mxu0 %v120_v52  ;;  %v209_v48 = vld [vmem:[#allocation8 + $0x408] sm:$0xff]  ;;  %v208_v49 = vld [vmem:[#allocation8 + $0x400] sm:$0xff]  ;;  %v271_v50 = vld [vmem:[#allocation8 + $0x5f8] sm:$0xff] }
  0x5f   :  { %406 = vmatpush2.msra.mxu1 %v184_v53  ;;  %336 = vmatprep.subr.mxu0 %v119_v54  ;;  %v270_v51 = vld [vmem:[#allocation8 + $0x5f0] sm:$0xff]  ;;  %v269_v52 = vld [vmem:[#allocation8 + $0x5e8] sm:$0xff]  ;;  %v268_v53 = vld [vmem:[#allocation8 + $0x5e0] sm:$0xff] }
  0x60   :  { %407 = vmatprep.subr.mxu1 %v183_v55  ;;  %337 = vmatpush2.msra.mxu0 %v118_v56  ;;  %v267_v54 = vld [vmem:[#allocation8 + $0x5d8] sm:$0xff]  ;;  %v266_v55 = vld [vmem:[#allocation8 + $0x5d0] sm:$0xff]  ;;  %v265_v56 = vld [vmem:[#allocation8 + $0x5c8] sm:$0xff] }
  0x61   :  { %408 = vmatpush2.msra.mxu1 %v182_v57  ;;  %338 = vmatprep.subr.mxu0 %v117_v58  ;;  %v264_v57 = vld [vmem:[#allocation8 + $0x5c0] sm:$0xff]  ;;  %v263_v58 = vld [vmem:[#allocation8 + $0x5b8] sm:$0xff] }
  0x62   :  { %409 = vmatprep.subr.mxu1 %v181_v59  ;;  %339 = vmatpush2.msra.mxu0 %v116_v60  ;;  %v262_v59 = vld [vmem:[#allocation8 + $0x5b0] sm:$0xff]  ;;  %v261_v60 = vld [vmem:[#allocation8 + $0x5a8] sm:$0xff]  ;;  %v657_v15 = vld [vmem:[%s1049_s3] sm:$0x3]  ;;  %s965_s3 = smov [#allocation11]  }
  0x63   :  { %410 = vmatpush2.msra.mxu1 %v180_v61  ;;  %340 = vmatprep.subr.mxu0 %v115_v62  ;;  %v260_v61 = vld [vmem:[#allocation8 + $0x5a0] sm:$0xff]  ;;  %v259_v62 = vld [vmem:[#allocation8 + $0x598] sm:$0xff]  ;;  %s809_s18 = sshll.u32 %s965_s3, 4  ;;  %s810_s18 = int_to_ptr.vmem [resolvable:$true] %s809_s18 }
  0x64   :  { %411 = vmatprep.subr.mxu1 %v179_v63  ;;  %341 = vmatpush2.msra.mxu0 %v114_v0  ;;  %v258_v63 = vld [vmem:[#allocation8 + $0x590] sm:$0xff]  ;;  %v257_v0 = vld [vmem:[#allocation8 + $0x588] sm:$0xff]  ;;  %s930_s19 = scalar_lea.vmem %s810_s18, 128  ;;  %p935_p2 = scmp.lt.s32.totalorder %s810_s18, %s810_s18 }
  0x65   :  { %412 = vmatpush2.msra.mxu1 %v178_v1  ;;  %342 = vmatprep.subr.mxu0 %v113_v2  ;;  %v256_v1 = vld [vmem:[#allocation8 + $0x580] sm:$0xff]  ;;  %v255_v2 = vld [vmem:[#allocation8 + $0x578] sm:$0xff]  ;;  %p931_p1 = scmp.ne.s32.totalorder %s810_s18, %s930_s19  ;;  %p936_p3 = scmp.lt.s32.totalorder %s930_s19, %s930_s19 }
  0x66   :  { %413 = vmatprep.subr.mxu1 %v177_v3  ;;  %343 = vmatpush2.msra.mxu0 %v112_v4  ;;  %v254_v3 = vld [vmem:[#allocation8 + $0x570] sm:$0xff]  ;;  %v253_v4 = vld [vmem:[#allocation8 + $0x568] sm:$0xff] }
  0x67   :  { %344 = vmatprep.mubr.f32.mxu0 %v74_v5  ;;  %414 = vmatpush2.msra.mxu1 %v176_v6  ;;  %v252_v5 = vld [vmem:[#allocation8 + $0x560] sm:$0xff]  ;;  %v251_v6 = vld [vmem:[#allocation8 + $0x558] sm:$0xff]  ;;  %p937_p4 = por %p936_p3, %p935_p2 }
  0x68   :  { %415 = vmatprep.mubr.f32.mxu1 %v76_v7  ;;  %345 = vmatmul.mubr.f32.vlgmr.msra.gmra.mxu0 %v73_v8  ;;  %v250_v7 = vld [vmem:[#allocation8 + $0x550] sm:$0xff]  ;;  %v249_v8 = vld [vmem:[#allocation8 + $0x548] sm:$0xff] }
  0x69   :  { %416 = vmatmul.mubr.f32.vlgmr.msra.gmra.mxu1 %v75_v10  ;;  %422 = vmatprep.subr.mxu0 %v239_v11  ;;  %v248_v10 = vld [vmem:[#allocation8 + $0x540] sm:$0xff]  ;;  %v247_v11 = vld [vmem:[#allocation8 + $0x538] sm:$0xff]  ;;  %p938_p5 = pnand %p937_p4, %p931_p1 }
  0x6a   :  { %521 = vmatprep.subr.mxu1 %v275_v12  ;;  %423 = vmatpush1.msra.mxu0 %v238_v13  ;;  %v246_v12 = vld [vmem:[#allocation8 + $0x530] sm:$0xff]  ;;  %v245_v13 = vld [vmem:[#allocation8 + $0x528] sm:$0xff] }
  0x6b   :  { %522 = vmatpush1.msra.mxu1 %v274_v14  ;;  %424 = vmatprep.subr.mxu0 %v237_v16  ;;  %v244_v14 = vld [vmem:[#allocation8 + $0x520] sm:$0xff]  ;;  %v243_v16 = vld [vmem:[#allocation8 + $0x518] sm:$0xff] }
  0x6c   :  { %523 = vmatprep.subr.mxu1 %v273_v17  ;;  %425 = vmatpush1.msra.mxu0 %v236_v19  ;;  %v242_v17 = vld [vmem:[#allocation8 + $0x510] sm:$0xff]  ;;  %v241_v19 = vld [vmem:[#allocation8 + $0x508] sm:$0xff] }
  0x6d   :  { %486 = vmatprep.mubr.f32.mxu0 %v78_v20  ;;  %426 = vmatprep.subr.mxu0 %v235_v21  ;;  %v240_v20 = vld [vmem:[#allocation8 + $0x500] sm:$0xff]  ;;  %v77_v21 = vld [vmem:[#allocation5 + $0x20] sm:$0xff] }
  0x6e   :  { %524 = vmatpush1.msra.mxu1 %v272_v22  ;;  %427 = vmatpush1.msra.mxu0 %v234_v23  ;;  %v724_v22 = vld [vmem:[#allocation10 + $0xf8] sm:$0xff] }
  0x6f   :  { %557 = vmatprep.mubr.f32.mxu1 %v963_v18  ;;  %428 = vmatprep.subr.mxu0 %v233_v24  ;;  %v221_v18 = vld [vmem:[#allocation8 + $0x468] sm:$0xff]  ;;  %v708_v23 = vld [vmem:[#allocation10 + $0x78] sm:$0xff]  ;;  %v723_v24 = vld [vmem:[#allocation10 + $0xf0] sm:$0xff] }
  0x70   :  { %821 = vmatmul.mubr.msk.f32.vlgmr.msra.gmra.mxu1 %vm276_vm1, %v79_v25  ;;  %429 = vmatpush1.msra.mxu0 %v232_v26  ;;  %v707_v25 = vld [vmem:[#allocation10 + $0x70] sm:$0xff]  ;;  %v722_v26 = vld [vmem:[#allocation10 + $0xe8] sm:$0xff] }
  0x71   :  { %430 = vmatprep.subr.mxu0 %v231_v27  ;;  %823 = vmatprep.subr.mxu1 %v724_v22  ;;  %v706_v27 = vld [vmem:[#allocation10 + $0x68] sm:$0xff] }
  0x72   :  { %431 = vmatpush1.msra.mxu0 %v230_v28  ;;  %824 = vmatpush3.msra.mxu1 %v708_v23  ;;  %v721_v28 = vld [vmem:[#allocation10 + $0xe0] sm:$0xff]  ;;  %v592_v23 = vshrl.u32 %v67_v9, 7 }
  0x73   :  { %432 = vmatprep.subr.mxu0 %v229_v29  ;;  %825 = vmatprep.subr.mxu1 %v723_v24  ;;  %v705_v29 = vld [vmem:[#allocation10 + $0x60] sm:$0xff] }
  0x74   :  { %433 = vmatpush1.msra.mxu0 %v228_v30  ;;  %826 = vmatpush3.msra.mxu1 %v707_v25  ;;  %v720_v30 = vld [vmem:[#allocation10 + $0xd8] sm:$0xff]  ;;  %v609_v9 = vld [vmem:[#allocation4] sm:$0x3] }
  0x75   :  { %434 = vmatprep.subr.mxu0 %v227_v31  ;;  %827 = vmatprep.subr.mxu1 %v722_v26  ;;  %v704_v31 = vld [vmem:[#allocation10 + $0x58] sm:$0xff] }
  0x76   :  { %435 = vmatpush1.msra.mxu0 %v226_v32  ;;  %828 = vmatpush3.msra.mxu1 %v706_v27  ;;  %v719_v32 = vld [vmem:[#allocation10 + $0xd0] sm:$0xff] }
  0x77   :  { %436 = vmatprep.subr.mxu0 %v225_v33  ;;  %829 = vmatprep.subr.mxu1 %v721_v28  ;;  %v703_v33 = vld [vmem:[#allocation10 + $0x50] sm:$0xff] }
  0x78   :  { %437 = vmatpush1.msra.mxu0 %v224_v34  ;;  %830 = vmatpush3.msra.mxu1 %v705_v29  ;;  %v718_v34 = vld [vmem:[#allocation10 + $0xc8] sm:$0xff] }
  0x79   :  { %438 = vmatprep.subr.mxu0 %v223_v35  ;;  %831 = vmatprep.subr.mxu1 %v720_v30  ;;  %v702_v35 = vld [vmem:[#allocation10 + $0x48] sm:$0xff] }
  0x7a   :  { %439 = vmatpush1.msra.mxu0 %v222_v36  ;;  %832 = vmatpush3.msra.mxu1 %v704_v31  ;;  %v717_v36 = vld [vmem:[#allocation10 + $0xc0] sm:$0xff] }
  0x7b   :  { %440 = vmatprep.subr.mxu0 %v221_v18  ;;  %833 = vmatprep.subr.mxu1 %v719_v32  ;;  %v701_v18 = vld [vmem:[#allocation10 + $0x40] sm:$0xff] }
  0x7c   :  { %441 = vmatpush1.msra.mxu0 %v220_v37  ;;  %834 = vmatpush3.msra.mxu1 %v703_v33  ;;  %v716_v37 = vld [vmem:[#allocation10 + $0xb8] sm:$0xff] }
  0x7d   :  { %442 = vmatprep.subr.mxu0 %v219_v38  ;;  %835 = vmatprep.subr.mxu1 %v718_v34  ;;  %v700_v38 = vld [vmem:[#allocation10 + $0x38] sm:$0xff] }
  0x7e   :  { %443 = vmatpush1.msra.mxu0 %v218_v39  ;;  %836 = vmatpush3.msra.mxu1 %v702_v35  ;;  %v715_v39 = vld [vmem:[#allocation10 + $0xb0] sm:$0xff] }
  0x7f   :  { %444 = vmatprep.subr.mxu0 %v217_v40  ;;  %837 = vmatprep.subr.mxu1 %v717_v36  ;;  %v699_v40 = vld [vmem:[#allocation10 + $0x30] sm:$0xff] }
  0x80   :  { %445 = vmatpush1.msra.mxu0 %v216_v41  ;;  %838 = vmatpush3.msra.mxu1 %v701_v18  ;;  %v714_v41 = vld [vmem:[#allocation10 + $0xa8] sm:$0xff] }
  0x81   :  { %446 = vmatprep.subr.mxu0 %v215_v42  ;;  %839 = vmatprep.subr.mxu1 %v716_v37  ;;  %v698_v42 = vld [vmem:[#allocation10 + $0x28] sm:$0xff] }
  0x82   :  { %447 = vmatpush1.msra.mxu0 %v214_v43  ;;  %840 = vmatpush3.msra.mxu1 %v700_v38  ;;  %v713_v43 = vld [vmem:[#allocation10 + $0xa0] sm:$0xff] }
  0x83   :  { %448 = vmatprep.subr.mxu0 %v213_v44  ;;  %841 = vmatprep.subr.mxu1 %v715_v39  ;;  %v697_v44 = vld [vmem:[#allocation10 + $0x20] sm:$0xff] }
  0x84   :  { %449 = vmatpush1.msra.mxu0 %v212_v45  ;;  %842 = vmatpush3.msra.mxu1 %v699_v40  ;;  %v712_v45 = vld [vmem:[#allocation10 + $0x98] sm:$0xff]  ;;  %v572_v39 = vld [vmem:[#allocation3] sm:$0x3] }
  0x85   :  { %450 = vmatprep.subr.mxu0 %v211_v46  ;;  %843 = vmatprep.subr.mxu1 %v714_v41  ;;  %v696_v46 = vld [vmem:[#allocation10 + $0x18] sm:$0xff] }
  0x86   :  { %451 = vmatpush1.msra.mxu0 %v210_v47  ;;  %844 = vmatpush3.msra.mxu1 %v698_v42  ;;  %v711_v47 = vld [vmem:[#allocation10 + $0x90] sm:$0xff] }
  0x87   :  { %452 = vmatprep.subr.mxu0 %v209_v48  ;;  %845 = vmatprep.subr.mxu1 %v713_v43  ;;  %v695_v48 = vld [vmem:[#allocation10 + $0x10] sm:$0xff] }
  0x88   :  { %453 = vmatpush1.msra.mxu0 %v208_v49  ;;  %846 = vmatpush3.msra.mxu1 %v697_v44  ;;  %v710_v49 = vld [vmem:[#allocation10 + $0x88] sm:$0xff] }
  0x89   :  { %454 = vmatprep.subr.mxu0 %v271_v50  ;;  %847 = vmatprep.subr.mxu1 %v712_v45  ;;  %v694_v50 = vld [vmem:[#allocation10 + $0x8] sm:$0xff] }
  0x8a   :  { %455 = vmatpush2.msra.mxu0 %v270_v51  ;;  %848 = vmatpush3.msra.mxu1 %v696_v46  ;;  %v709_v51 = vld [vmem:[#allocation10 + $0x80] sm:$0xff] }
  0x8b   :  { %456 = vmatprep.subr.mxu0 %v269_v52  ;;  %849 = vmatprep.subr.mxu1 %v711_v47  ;;  %v693_v52 = vld [vmem:[#allocation10] sm:$0xff] }
  0x8c   :  { %457 = vmatpush2.msra.mxu0 %v268_v53  ;;  %850 = vmatpush3.msra.mxu1 %v695_v48 }
  0x8d   :  { %458 = vmatprep.subr.mxu0 %v267_v54  ;;  %851 = vmatprep.subr.mxu1 %v710_v49 }
  0x8e   :  { %459 = vmatpush2.msra.mxu0 %v266_v55  ;;  %852 = vmatpush3.msra.mxu1 %v694_v50 }
  0x8f   :  { %460 = vmatprep.subr.mxu0 %v265_v56  ;;  %853 = vmatprep.subr.mxu1 %v709_v51 }
  0x90   :  { %461 = vmatpush2.msra.mxu0 %v264_v57  ;;  %854 = vmatpush3.msra.mxu1 %v693_v52  ;;  %v653_v52 = vld [vmem:[%s1048_s2] sm:$0x3] }
  0x91   :  { %462 = vmatprep.subr.mxu0 %v263_v58 }
  0x92   :  { %463 = vmatpush2.msra.mxu0 %v262_v59 }
  0x93   :  { %464 = vmatprep.subr.mxu0 %v261_v60 }
  0x94   :  { %465 = vmatpush2.msra.mxu0 %v260_v61 }
  0x95   :  { %466 = vmatprep.subr.mxu0 %v259_v62 }
  0x96   :  { %467 = vmatpush2.msra.mxu0 %v258_v63 }
  0x97   :  { %468 = vmatprep.subr.mxu0 %v257_v0 }
  0x98   :  { %469 = vmatpush2.msra.mxu0 %v256_v1 }
  0x99   :  { %470 = vmatprep.subr.mxu0 %v255_v2 }
  0x9a   :  { %471 = vmatpush2.msra.mxu0 %v254_v3 }
  0x9b   :  { %472 = vmatprep.subr.mxu0 %v253_v4 }
  0x9c   :  { %473 = vmatpush2.msra.mxu0 %v252_v5 }
  0x9d   :  { %474 = vmatprep.subr.mxu0 %v251_v6 }
  0x9e   :  { %475 = vmatpush2.msra.mxu0 %v250_v7 }
  0x9f   :  { %476 = vmatprep.subr.mxu0 %v249_v8 }
  0xa0   :  { %477 = vmatpush2.msra.mxu0 %v248_v10  ;;  %v964_v10 = vmov 1966171168  }
  0xa1   :  { %478 = vmatprep.subr.mxu0 %v247_v11  ;;  %v589_v11 = vunpack.c.l.s4 %v964_v10 }
  0xa2   :  { %479 = vmatpush2.msra.mxu0 %v246_v12 }
  0xa3   :  { %480 = vmatprep.subr.mxu0 %v245_v13  ;;  %v590_v22 = vunpack.c.0.s8 %v589_v11 }
  0xa4   :  { %481 = vmatpush2.msra.mxu0 %v244_v14 }
  0xa5   :  { %482 = vmatprep.subr.mxu0 %v243_v16  ;;  %v593_v31 = vsub.s32 %v590_v22, %v592_v23 }
  0xa6   :  { %483 = vmatpush2.msra.mxu0 %v242_v17 }
  0xa7   :  { %484 = vmatprep.subr.mxu0 %v241_v19 }
  0xa8   :  { %485 = vmatpush2.msra.mxu0 %v240_v20 }
  0xa9   :  { %487 = vmatmul.mubr.f32.vlgmr.msra.gmra.mxu0 %v77_v21 }
 0x128   :  { %v346_v53 = vpop.f32.mrf.mxu0 }
 0x129   :  { %v417_v54 = vpop.f32.mrf.mxu1 }
 0x12a   :  { %v348_v55 = vpop.f32.mrf.mxu0  ;;  %v418_v57 = vadd.f32 %v417_v54, %v346_v53  ;;  %v672_v53 = vsub.s32 1, %v592_v23  ;;  %v668_v54 = vsub.s32 0, %v592_v23 }
 0x12b   :  { %v419_v56 = vpop.f32.mrf.mxu1 }
 0x12c   :  { %v420_v60 = vadd.f32 %v419_v56, %v348_v55 }
 0x130   :  { %v559_v59 = vpop.f32.mrf.mxu1 }
 0x132   :  { %v561_v1 = vpop.f32.mrf.mxu1 }
 0x169   :  { %v488_v58 = vpop.f32.mrf.mxu0 }
 0x16a   :  { %v489_v61 = vadd.f32 %v488_v58, %v418_v57 }
 0x16b   :  { %v490_v62 = vpop.f32.mrf.mxu0 }
 0x16c   :  { %v1022_v63 = vadd.f32 %v559_v59, %v489_v61  ;;  %v491_v0 = vadd.f32 %v490_v62, %v420_v60 }
 0x16e   :  { %v573_v2 = vrot.slane %v1022_v63, 4  ;;  %v610_v3 = vmul.f32 %v1022_v63, %v1022_v63  ;;  %v562_v4 = vadd.f32 %v561_v1, %v491_v0 }
 0x170   :  { %v574_v5 = vadd.f32 %v573_v2, %v1022_v63  ;;  %v612_v6 = vrot.slane %v610_v3, 4  ;;  %v579_v7 = vrot.slane %v562_v4, 4  ;;  %v611_v8 = vmul.f32 %v562_v4, %v562_v4 }
 0x172   :  { %v575_v12 = vrot.slane %v574_v5, 2  ;;  %v613_v13 = vadd.f32 %v612_v6, %v610_v3  ;;  %v580_v14 = vadd.f32 %v579_v7, %v562_v4  ;;  %v618_v16 = vrot.slane %v611_v8, 4 }
 0x174   :  { %v576_v17 = vadd.f32 %v575_v12, %v574_v5  ;;  %v614_v19 = vrot.slane %v613_v13, 2  ;;  %v581_v20 = vrot.slane %v580_v14, 2  ;;  %v619_v21 = vadd.f32 %v618_v16, %v611_v8  ;;  %v822_v8 = vld [vmem:[%s1051_s5] ss:$0 sm:$0xff] }
 0x176   :  { %v577_v24 = vrot.slane %v576_v17, 1  ;;  %v615_v25 = vadd.f32 %v614_v19, %v613_v13  ;;  %v582_v26 = vadd.f32 %v581_v20, %v580_v14  ;;  %v620_v27 = vrot.slane %v619_v21, 2 }
 0x178   :  { %v616_v28 = vrot.slane %v615_v25, 1  ;;  %v583_v29 = vrot.slane %v582_v26, 1  ;;  %v621_v30 = vadd.f32 %v620_v27, %v619_v21  ;;  %v578_v32 = vadd.f32 %v577_v24, %v576_v17 }
 0x17a   :  { %v584_v33 = vadd.f32 %v583_v29, %v582_v26  ;;  %v622_v34 = vrot.slane %v621_v30, 1  ;;  %v617_v35 = vadd.f32 %v616_v28, %v615_v25 }
 0x17c   :  { %v587_v36 = vcombine.low %v578_v32, %v584_v33  ;;  %v623_v18 = vadd.f32 %v622_v34, %v621_v30 }
 0x17e   :  { %v594_v37 = vrot.slane %v587_v36, %v593_v31  ;;  %v626_v38 = vcombine.low %v617_v35, %v623_v18 }
 0x180   :  { %v601_v40 = vrot.slane %v594_v37, %v593_v31  ;;  %v633_v41 = vrot.slane %v626_v38, %v593_v31 }
 0x182   :  { %v603_v42 = vadd.f32 %v601_v40, %v572_v39  ;;  %v640_v43 = vrot.slane %v633_v41, %v593_v31 }
 0x184   :  { %608 = vst.msk [vmem:[#allocation3] sm:$0x3] %vm1011_vm0, %v603_v42  ;;  %v642_v44 = vadd.f32 %v640_v43, %v609_v9 }
 0x186   :  { %643 = vst.msk [vmem:[#allocation4] sm:$0x3] %vm1011_vm0, %v642_v44 }
 0x18b   :  { %v647_v45 = vld [vmem:[#allocation3] sm:$0x3] }
 0x18c   :  { %v648_v46 = vmul.f32 0.125, %v647_v45 }
 0x18d   :  { %v649_v47 = vld [vmem:[#allocation4] sm:$0x3] }
 0x18e   :  { %v650_v48 = vmul.f32 0.125, %v649_v47  ;;  %v651_v49 = vmul.f32 %v648_v46, %v648_v46 }
 0x190   :  { %v652_v50 = vsub.f32 %v650_v48, %v651_v49 }
 0x192   :  { %v654_v51 = vadd.f32 1e-05, %v652_v50 }
 0x194   :  { %868 = vrsqrt.f32 %v654_v51 }
 0x1a1   :  { %v869_v55 = vpop.eup %868 }
 0x1a2   :  { %v656_v56 = vmul.f32 %v869_v55, %v653_v52 }
 0x1a4   :  { %v658_v57 = vmul.f32 %v656_v56, %v648_v46  ;;  %v673_v58 = vrot.slane %v656_v56, %v672_v53  ;;  %v669_v59 = vrot.slane %v656_v56, %v668_v54 }
 0x1a6   :  { %v659_v60 = vsub.f32 %v657_v15, %v658_v57  ;;  %v677_v61 = vmul.f32 %v673_v58, %v562_v4  ;;  %v676_v0 = vmul.f32 %v669_v59, %v1022_v63 }
 0x1a8   :  { %v686_v62 = vrot.slane %v659_v60, %v672_v53  ;;  %v682_v1 = vrot.slane %v659_v60, %v668_v54 }
 0x1aa   :  { %v690_v2 = vadd.f32 %v686_v62, %v677_v61  ;;  %v689_v3 = vadd.f32 %v682_v1, %v676_v0 }
 0x1ac   :  { %v692_v5 = vmax.f32 %v690_v2, 0.0  ;;  %v691_v6 = vmax.f32 %v689_v3, 0.0 }
 0x1ae   :  { %796 = vmatprep.mubr.f32.mxu1 %v692_v5 }
 0x1af   :  { %797 = vmatmul.mubr.f32.vlgmr.msra.gmra.mxu1 %v691_v6 }
 0x26f   :  { %v855_v7 = vpop.f32.mrf.mxu1 }
 0x271   :  { %v856_v10 = vpop.f32.mrf.mxu1 }
 0x272   :  { %v857_v11 = vadd.f32 %v856_v10, %v855_v7 }
 0x274   :  { %v799_v4 = vadd.f32 %v857_v11, %v822_v8 }
 0x276   :  { %802 = vst [vmem:[#allocation11] sm:$0xff] %v799_v4 }
 0x277   :  { %941 = shalt.err (!%p938_p5)
}
 0x278   :  { %812 = dma.vmem_to_hbm [thread:$0]  %s810_s18, 128, %s1052_s6, [#allocation7]  }
 0x279   :  { %954 = dma.done.wait [#allocation7], 128  }
 0x27a   :  { %955 = vsyncadd [#allocation7], 4294967168 }
 0x27b   :  { %816 = vsyncpa [#allocation6], 1 }
 0x27c   :  { %817 = vsyncpa [#allocation9], 1 }
 0x27d   :  { %818 = vsyncpa [#allocation7], 1 }

</bundles_post_ra>
